<compile_context>
chip_gen: v6e
topology: v6e:2x2x1
jax: 0.10.0
libtpu: 0.0.40
codegen_flags: <defaults>
</compile_context>

<pallas_src>
import numpy as np
import jax
import jax.numpy as jnp
from jax.experimental import pallas as pl
from jax.experimental.pallas import tpu as pltpu


def bottleneck1d_kernel(x_ref, halo_ref, w1_ref, w2_ref, w3_ref,
                        b1_ref, b2_ref, b3_ref, o_ref):
    """One (batch, L-tile) grid step, channel-first layout.

    x_ref    : (1, Cin, TL)  input tile (f32)
    halo_ref : (1, 1, P, 2)  h1 at columns tile_start-1 / tile_end (f32, 0 at edges)
    w1_ref   : (P,    Cin)   bn1-scale-folded conv1 weight (matmul dtype)
    w2_ref   : (3, P, P)     bn2-scale-folded conv2 taps, laid out (tap, out, in)
    w3_ref   : (Cout, P)     bn3-scale-folded conv3 weight
    b*_ref   : (C, 1)        folded BN biases (f32)
    o_ref    : (1, Cout, TL)
    """
    mm_dtype = w1_ref.dtype

    # --- conv1 (1x1) + bn1 bias + relu ---------------------------------------
    xb = x_ref[0].astype(mm_dtype)                                       # (Cin, TL)
    h1 = jnp.dot(w1_ref[...], xb, preferred_element_type=jnp.float32)    # (P, TL)
    h1 = jnp.maximum(h1 + b1_ref[...], 0.0)

    # --- conv2 (k=3, stride=1, pad=1) + bn2 bias + relu -----------------------
    P, TL = h1.shape
    halo = halo_ref[0, 0]                                                # (P, 2) f32
    lane = jax.lax.broadcasted_iota(jnp.int32, (P, TL), 1)
    if TL % 128 == 0:
        prev = pltpu.roll(h1, 1, 1)        # prev[:, t] = h1[:, t-1] (wraps at t=0)
        nxt = pltpu.roll(h1, TL - 1, 1)    # nxt[:, t]  = h1[:, t+1] (wraps at t=TL-1)
    else:  # tiny / ragged fallback: single full-length tile, explicit shifts
        zero = jnp.zeros((P, 1), h1.dtype)
        prev = jnp.concatenate([zero, h1[:, :-1]], axis=1)
        nxt = jnp.concatenate([h1[:, 1:], zero], axis=1)
    h1_m1 = jnp.where(lane == 0, halo[:, 0:1], prev).astype(mm_dtype)
    h1_p1 = jnp.where(lane == TL - 1, halo[:, 1:2], nxt).astype(mm_dtype)
    h1_b = h1.astype(mm_dtype)
    h2 = (jnp.dot(w2_ref[0], h1_m1, preferred_element_type=jnp.float32)
          + jnp.dot(w2_ref[1], h1_b, preferred_element_type=jnp.float32)
          + jnp.dot(w2_ref[2], h1_p1, preferred_element_type=jnp.float32))
    h2 = jnp.maximum(h2 + b2_ref[...], 0.0)

    # --- conv3 (1x1) + bn3 bias ----------------------------------------------
    h3 = jnp.dot(w3_ref[...], h2.astype(mm_dtype),
                 preferred_element_type=jnp.float32)                     # (Cout, TL)
    h3 = h3 + b3_ref[...]

    # --- residual add + relu (re-read the x tile; keeps its live range short) --
    o_ref[0] = jnp.maximum(h3 + x_ref[0].astype(jnp.float32), 0.0).astype(o_ref.dtype)


def fold_bn(gamma, beta, running_mean, running_var, eps=1e-5):
    scale = gamma / jnp.sqrt(running_var + eps)
    bias = beta - running_mean * scale
    return scale.astype(jnp.float32), bias.astype(jnp.float32)


def _choose_tile_l(L, Cin, Cout, P, budget_bytes=8 << 20):
    """Largest lane-aligned (multiple of 128) L-tile dividing L within a VMEM budget."""
    if L % 128 != 0:
        # TODO(synk): pad ragged lengths up to a multiple of 128 for lane-dense tiling.
        return L
    per_col = 4 * (2 * Cin + 2 * Cout + 8 * max(P, Cout))  # dbl-buffered I/O + live f32
    tl = min(L, max(128, (budget_bytes // per_col) // 128 * 128))
    while L % tl:
        tl -= 128
    return tl


def bottleneck1d_forward(x_ncl, params, *, tl=None, use_bf16=True):
    """x_ncl: (N, Cin, L) float32 in PyTorch NCL layout. Returns (N, 4*planes, L)."""
    N, Cin, L = x_ncl.shape
    w1, w2, w3 = params["w1"], params["w2"], params["w3"]  # (Cin,P), (3,P,P), (P,4P)
    P = w1.shape[1]
    Cout = w3.shape[1]
    assert Cout == Cin, "residual add requires inplanes == 4*planes"

    mm_dtype = jnp.bfloat16 if use_bf16 else jnp.float32

    # Fold BN scales into the conv weights (transposed to (out, in) for channel-first
    # matmuls); only the biases are applied in-kernel.
    s1, b1 = fold_bn(params["g1"], params["be1"], params["rm1"], params["rv1"])
    s2, b2 = fold_bn(params["g2"], params["be2"], params["rm2"], params["rv2"])
    s3, b3 = fold_bn(params["g3"], params["be3"], params["rm3"], params["rv3"])
    w1k = (w1 * s1[None, :]).T.astype(mm_dtype)                              # (P, Cin)
    w2k = jnp.transpose(w2 * s2[None, None, :], (0, 2, 1)).astype(mm_dtype)  # (3, P, P)
    w3k = (w3 * s3[None, :]).T.astype(mm_dtype)                              # (Cout, P)
    b1c = b1.reshape(P, 1)
    b2c = b2.reshape(P, 1)
    b3c = b3.reshape(Cout, 1)

    if tl is None:
        tl = _choose_tile_l(L, Cin, Cout, P)
    assert L % tl == 0 and (tl == L or tl % 128 == 0), "tile must divide L and be lane-aligned"
    nt = L // tl

    # conv2 halo: h1 at global columns l*tl-1 and (l+1)*tl for each tile, zero at the
    # global boundaries (== conv2's zero padding of h1). Tiny side input: (N, nt, P, 2).
    cols = np.stack([np.arange(nt) * tl - 1, (np.arange(nt) + 1) * tl], axis=-1)  # (nt, 2)
    valid = jnp.asarray((cols >= 0) & (cols < L))
    x_halo = jnp.transpose(x_ncl[:, :, np.clip(cols, 0, L - 1)], (0, 2, 1, 3))    # (N,nt,Cin,2)
    h1_halo = jnp.einsum("pc,nzcj->nzpj", w1k, x_halo.astype(mm_dtype),
                         preferred_element_type=jnp.float32)
    h1_halo = jnp.maximum(h1_halo + b1c.reshape(1, 1, P, 1), 0.0)
    h1_halo = jnp.where(valid[None, :, None, :], h1_halo, 0.0)                    # (N,nt,P,2)

    # VMEM budget: double-buffered x/out tiles + live f32 intermediates + weights.
    vmem_bytes = (4 * tl * (2 * Cin + 2 * Cout + 8 * max(P, Cout))
                  + 4 * (P * Cin + 3 * P * P + Cout * P) + (1 << 20))
    vmem_limit = int(min(max(2 * vmem_bytes, 4 << 20), 32 << 20))

    out = pl.pallas_call(
        bottleneck1d_kernel,
        out_shape=jax.ShapeDtypeStruct((N, Cout, L), x_ncl.dtype),
        grid_spec=pltpu.PrefetchScalarGridSpec(
            num_scalar_prefetch=0,
            grid=(N, nt),
            in_specs=[
                pl.BlockSpec((1, Cin, tl), lambda n, l: (n, 0, l)),      # x tile
                pl.BlockSpec((1, 1, P, 2), lambda n, l: (n, l, 0, 0)),   # h1 halo
                pl.BlockSpec((P, Cin), lambda n, l: (0, 0)),             # w1 (folded)
                pl.BlockSpec((3, P, P), lambda n, l: (0, 0, 0)),         # w2 (folded)
                pl.BlockSpec((Cout, P), lambda n, l: (0, 0)),            # w3 (folded)
                pl.BlockSpec((P, 1), lambda n, l: (0, 0)),               # b1
                pl.BlockSpec((P, 1), lambda n, l: (0, 0)),               # b2
                pl.BlockSpec((Cout, 1), lambda n, l: (0, 0)),            # b3
            ],
            out_specs=pl.BlockSpec((1, Cout, tl), lambda n, l: (n, 0, l)),
        ),
        compiler_params=pltpu.CompilerParams(
            dimension_semantics=("parallel", "parallel"),
            vmem_limit_bytes=vmem_limit),
    )(x_ncl, h1_halo, w1k, w2k, w3k, b1c, b2c, b3c)
    return out


def reference_forward(x_ncl, params, *, use_bf16=True):
    """Pure-JAX reference with the same BN folding and matmul precision."""
    mmdt = jnp.bfloat16 if use_bf16 else jnp.float32
    s1, b1 = fold_bn(params["g1"], params["be1"], params["rm1"], params["rv1"])
    s2, b2 = fold_bn(params["g2"], params["be2"], params["rm2"], params["rv2"])
    s3, b3 = fold_bn(params["g3"], params["be3"], params["rm3"], params["rv3"])
    w1s = (params["w1"] * s1[None, :]).astype(mmdt)                      # (Cin, P)
    w2s = (params["w2"] * s2[None, None, :]).astype(mmdt)                # (3, P, P)
    w3s = (params["w3"] * s3[None, :]).astype(mmdt)                      # (P, Cout)
    x = jnp.transpose(x_ncl, (0, 2, 1))                                  # (N, L, Cin) f32
    h1 = jnp.einsum("nlc,cp->nlp", x.astype(mmdt), w1s,
                    preferred_element_type=jnp.float32) + b1
    h1 = jnp.maximum(h1, 0.0)
    h1p = jnp.pad(h1.astype(mmdt), ((0, 0), (1, 1), (0, 0)))
    h2 = (jnp.einsum("nlc,cp->nlp", h1p[:, :-2], w2s[0], preferred_element_type=jnp.float32)
          + jnp.einsum("nlc,cp->nlp", h1p[:, 1:-1], w2s[1], preferred_element_type=jnp.float32)
          + jnp.einsum("nlc,cp->nlp", h1p[:, 2:], w2s[2], preferred_element_type=jnp.float32))
    h2 = jnp.maximum(h2 + b2, 0.0)
    h3 = jnp.einsum("nlp,pq->nlq", h2.astype(mmdt), w3s,
                    preferred_element_type=jnp.float32) + b3
    out = jnp.maximum(h3 + x, 0.0)
    return jnp.transpose(out, (0, 2, 1))


def init_params(key, inplanes, planes):
    ks = jax.random.split(key, 12)
    cout = planes * 4
    return {
        # conv1 weight (planes, inplanes, 1) -> stored as (inplanes, planes)
        "w1": 0.1 * jax.random.normal(ks[0], (inplanes, planes), jnp.float32),
        # conv2 weight (planes, planes, 3) -> stored as (3, planes_in, planes_out)
        "w2": 0.1 * jax.random.normal(ks[1], (3, planes, planes), jnp.float32),
        # conv3 weight (4*planes, planes, 1) -> stored as (planes, 4*planes)
        "w3": 0.1 * jax.random.normal(ks[2], (planes, cout), jnp.float32),
        "g1": 0.5 + jax.random.uniform(ks[3], (planes,), jnp.float32),
        "be1": 0.1 * jax.random.normal(ks[4], (planes,), jnp.float32),
        "rm1": 0.1 * jax.random.normal(ks[5], (planes,), jnp.float32),
        "rv1": 0.5 + jax.random.uniform(ks[6], (planes,), jnp.float32),
        "g2": 0.5 + jax.random.uniform(ks[7], (planes,), jnp.float32),
        "be2": 0.1 * jax.random.normal(ks[8], (planes,), jnp.float32),
        "rm2": 0.1 * jax.random.normal(ks[9], (planes,), jnp.float32),
        "rv2": 0.5 + jax.random.uniform(ks[10], (planes,), jnp.float32),
        "g3": 0.5 + jax.random.uniform(ks[11], (cout,), jnp.float32),
        "be3": jnp.zeros((cout,), jnp.float32),
        "rm3": jnp.zeros((cout,), jnp.float32),
        "rv3": jnp.ones((cout,), jnp.float32),
    }


if __name__ == "__main__":
    key = jax.random.PRNGKey(0)
    kx, kp = jax.random.split(key)

    # Bottleneck1d(inplanes=32, planes=8): out channels = 4*8 = 32 == inplanes.
    N, inplanes, planes, L = 2, 32, 8, 256
    x = jax.random.normal(kx, (N, inplanes, L), jnp.float32)   # NCL, like PyTorch
    params = init_params(kp, inplanes, planes)

    ref = reference_forward(x, params, use_bf16=True)

    # Auto-sized L tile.
    out = jax.block_until_ready(bottleneck1d_forward(x, params))
    assert out.shape == (N, planes * 4, L)
    assert jnp.allclose(out, ref, atol=1e-3, rtol=1e-3), "mismatch vs reference (auto tile)"

    # Force two L-tiles to exercise the conv2 halo / roll boundary handling.
    out_tiled = jax.block_until_ready(bottleneck1d_forward(x, params, tl=128))
    assert jnp.allclose(out_tiled, ref, atol=1e-3, rtol=1e-3), "mismatch vs reference (tiled)"

    print("KERNEL_OK")
</pallas_src>

<mosaic_0001>
module attributes {stable_mosaic.version = 11 : i64} {
  func.func @bottleneck1d_kernel(%arg0: i32, %arg1: i32, %arg2: memref<1x32x256xf32, #tpu.memory_space<vmem>>, %arg3: memref<1x1x8x2xf32, #tpu.memory_space<vmem>>, %arg4: memref<8x32xbf16, #tpu.memory_space<vmem>>, %arg5: memref<3x8x8xbf16, #tpu.memory_space<vmem>>, %arg6: memref<32x8xbf16, #tpu.memory_space<vmem>>, %arg7: memref<8x1xf32, #tpu.memory_space<vmem>>, %arg8: memref<8x1xf32, #tpu.memory_space<vmem>>, %arg9: memref<32x1xf32, #tpu.memory_space<vmem>>, %arg10: memref<1x32x256xf32, #tpu.memory_space<vmem>>) attributes {dimension_semantics = [#tpu.dimension_semantics<parallel>, #tpu.dimension_semantics<parallel>], iteration_bounds = array<i64: 2, 1>, scalar_prefetch = 0 : i64, scratch_operands = 0 : i64, tpu.core_type = #tpu.core_type<tc>, window_params = [{transform_indices = @transform_0, window_bounds = array<i64: 1, 32, 256>}, {transform_indices = @transform_1, window_bounds = array<i64: 1, 1, 8, 2>}, {pipeline_mode = #tpu.pipeline_mode<synchronous>, transform_indices = @transform_2, window_bounds = array<i64: 8, 32>}, {pipeline_mode = #tpu.pipeline_mode<synchronous>, transform_indices = @transform_3, window_bounds = array<i64: 3, 8, 8>}, {pipeline_mode = #tpu.pipeline_mode<synchronous>, transform_indices = @transform_4, window_bounds = array<i64: 32, 8>}, {pipeline_mode = #tpu.pipeline_mode<synchronous>, transform_indices = @transform_5, window_bounds = array<i64: 8, 1>}, {pipeline_mode = #tpu.pipeline_mode<synchronous>, transform_indices = @transform_6, window_bounds = array<i64: 8, 1>}, {pipeline_mode = #tpu.pipeline_mode<synchronous>, transform_indices = @transform_7, window_bounds = array<i64: 32, 1>}, {transform_indices = @transform_8, window_bounds = array<i64: 1, 32, 256>}]} {
    %c0 = arith.constant 0 : index
    %c0_0 = arith.constant 0 : index
    %c0_1 = arith.constant 0 : index
    %0 = vector.load %arg2[%c0, %c0_0, %c0_1] : memref<1x32x256xf32, #tpu.memory_space<vmem>>, vector<1x32x256xf32>
    %1 = vector.shape_cast %0 : vector<1x32x256xf32> to vector<32x256xf32>
    %2 = arith.truncf %1 : vector<32x256xf32> to vector<32x256xbf16>
    %c0_2 = arith.constant 0 : index
    %c0_3 = arith.constant 0 : index
    %3 = vector.load %arg4[%c0_2, %c0_3] : memref<8x32xbf16, #tpu.memory_space<vmem>>, vector<8x32xbf16>
    %cst = arith.constant dense<0.000000e+00> : vector<8x256xf32>
    %4 = tpu.matmul %3, %2, %cst {dimension_numbers = #tpu.dot_dimension_numbers<[1], [0], [0], [1], [0, 0, 1, 1], [], []>} : vector<8x32xbf16>, vector<32x256xbf16>, vector<8x256xf32> -> vector<8x256xf32>
    %c0_4 = arith.constant 0 : index
    %c0_5 = arith.constant 0 : index
    %5 = vector.load %arg7[%c0_4, %c0_5] : memref<8x1xf32, #tpu.memory_space<vmem>>, vector<8x1xf32>
    %6 = vector.broadcast %5 : vector<8x1xf32> to vector<8x256xf32>
    %7 = arith.addf %4, %6 : vector<8x256xf32>
    %cst_6 = arith.constant 0.000000e+00 : f32
    %8 = vector.broadcast %cst_6 : f32 to vector<8x256xf32>
    %9 = arith.maximumf %7, %8 : vector<8x256xf32>
    %c0_7 = arith.constant 0 : index
    %c0_8 = arith.constant 0 : index
    %c0_9 = arith.constant 0 : index
    %c0_10 = arith.constant 0 : index
    %10 = vector.load %arg3[%c0_7, %c0_8, %c0_9, %c0_10] : memref<1x1x8x2xf32, #tpu.memory_space<vmem>>, vector<1x1x8x2xf32>
    %11 = vector.shape_cast %10 : vector<1x1x8x2xf32> to vector<8x2xf32>
    %12 = tpu.iota {dimensions = array<i32: 1>} : vector<8x256xi32>
    %c1_i32 = arith.constant 1 : i32
    %13 = tpu.dynamic_rotate %9 by %c1_i32 dim 1 : vector<8x256xf32>, i32 -> vector<8x256xf32>
    %c255_i32 = arith.constant 255 : i32
    %14 = tpu.dynamic_rotate %9 by %c255_i32 dim 1 : vector<8x256xf32>, i32 -> vector<8x256xf32>
    %c0_i32 = arith.constant 0 : i32
    %15 = vector.broadcast %c0_i32 : i32 to vector<8x256xi32>
    %16 = arith.cmpi eq, %12, %15 : vector<8x256xi32>
    %17 = vector.extract_strided_slice %11 {offsets = [0, 0], sizes = [8, 1], strides = [1, 1]} : vector<8x2xf32> to vector<8x1xf32>
    %18 = vector.shape_cast %17 : vector<8x1xf32> to vector<8x1xf32>
    %19 = vector.broadcast %18 : vector<8x1xf32> to vector<8x256xf32>
    %20 = arith.select %16, %19, %13 : vector<8x256xi1>, vector<8x256xf32>
    %21 = arith.truncf %20 : vector<8x256xf32> to vector<8x256xbf16>
    %c255_i32_11 = arith.constant 255 : i32
    %22 = vector.broadcast %c255_i32_11 : i32 to vector<8x256xi32>
    %23 = arith.cmpi eq, %12, %22 : vector<8x256xi32>
    %24 = vector.extract_strided_slice %11 {offsets = [0, 1], sizes = [8, 1], strides = [1, 1]} : vector<8x2xf32> to vector<8x1xf32>
    %25 = vector.shape_cast %24 : vector<8x1xf32> to vector<8x1xf32>
    %26 = vector.broadcast %25 : vector<8x1xf32> to vector<8x256xf32>
    %27 = arith.select %23, %26, %14 : vector<8x256xi1>, vector<8x256xf32>
    %28 = arith.truncf %27 : vector<8x256xf32> to vector<8x256xbf16>
    %29 = arith.truncf %9 : vector<8x256xf32> to vector<8x256xbf16>
    %c0_12 = arith.constant 0 : index
    %c0_13 = arith.constant 0 : index
    %c0_14 = arith.constant 0 : index
    %30 = vector.load %arg5[%c0_12, %c0_13, %c0_14] : memref<3x8x8xbf16, #tpu.memory_space<vmem>>, vector<1x8x8xbf16>
    %31 = vector.shape_cast %30 : vector<1x8x8xbf16> to vector<8x8xbf16>
    %cst_15 = arith.constant dense<0.000000e+00> : vector<8x256xf32>
    %32 = tpu.matmul %31, %21, %cst_15 {dimension_numbers = #tpu.dot_dimension_numbers<[1], [0], [0], [1], [0, 0, 1, 1], [], []>} : vector<8x8xbf16>, vector<8x256xbf16>, vector<8x256xf32> -> vector<8x256xf32>
    %c1 = arith.constant 1 : index
    %c0_16 = arith.constant 0 : index
    %c0_17 = arith.constant 0 : index
    %33 = vector.load %arg5[%c1, %c0_16, %c0_17] : memref<3x8x8xbf16, #tpu.memory_space<vmem>>, vector<1x8x8xbf16>
    %34 = vector.shape_cast %33 : vector<1x8x8xbf16> to vector<8x8xbf16>
    %cst_18 = arith.constant dense<0.000000e+00> : vector<8x256xf32>
    %35 = tpu.matmul %34, %29, %cst_18 {dimension_numbers = #tpu.dot_dimension_numbers<[1], [0], [0], [1], [0, 0, 1, 1], [], []>} : vector<8x8xbf16>, vector<8x256xbf16>, vector<8x256xf32> -> vector<8x256xf32>
    %36 = arith.addf %32, %35 : vector<8x256xf32>
    %c2 = arith.constant 2 : index
    %c0_19 = arith.constant 0 : index
    %c0_20 = arith.constant 0 : index
    %37 = vector.load %arg5[%c2, %c0_19, %c0_20] : memref<3x8x8xbf16, #tpu.memory_space<vmem>>, vector<1x8x8xbf16>
    %38 = vector.shape_cast %37 : vector<1x8x8xbf16> to vector<8x8xbf16>
    %cst_21 = arith.constant dense<0.000000e+00> : vector<8x256xf32>
    %39 = tpu.matmul %38, %28, %cst_21 {dimension_numbers = #tpu.dot_dimension_numbers<[1], [0], [0], [1], [0, 0, 1, 1], [], []>} : vector<8x8xbf16>, vector<8x256xbf16>, vector<8x256xf32> -> vector<8x256xf32>
    %40 = arith.addf %36, %39 : vector<8x256xf32>
    %c0_22 = arith.constant 0 : index
    %c0_23 = arith.constant 0 : index
    %41 = vector.load %arg8[%c0_22, %c0_23] : memref<8x1xf32, #tpu.memory_space<vmem>>, vector<8x1xf32>
    %42 = vector.broadcast %41 : vector<8x1xf32> to vector<8x256xf32>
    %43 = arith.addf %40, %42 : vector<8x256xf32>
    %cst_24 = arith.constant 0.000000e+00 : f32
    %44 = vector.broadcast %cst_24 : f32 to vector<8x256xf32>
    %45 = arith.maximumf %43, %44 : vector<8x256xf32>
    %c0_25 = arith.constant 0 : index
    %c0_26 = arith.constant 0 : index
    %46 = vector.load %arg6[%c0_25, %c0_26] : memref<32x8xbf16, #tpu.memory_space<vmem>>, vector<32x8xbf16>
    %47 = arith.truncf %45 : vector<8x256xf32> to vector<8x256xbf16>
    %cst_27 = arith.constant dense<0.000000e+00> : vector<32x256xf32>
    %48 = tpu.matmul %46, %47, %cst_27 {dimension_numbers = #tpu.dot_dimension_numbers<[1], [0], [0], [1], [0, 0, 1, 1], [], []>} : vector<32x8xbf16>, vector<8x256xbf16>, vector<32x256xf32> -> vector<32x256xf32>
    %c0_28 = arith.constant 0 : index
    %c0_29 = arith.constant 0 : index
    %49 = vector.load %arg9[%c0_28, %c0_29] : memref<32x1xf32, #tpu.memory_space<vmem>>, vector<32x1xf32>
    %50 = vector.broadcast %49 : vector<32x1xf32> to vector<32x256xf32>
    %51 = arith.addf %48, %50 : vector<32x256xf32>
    %c0_30 = arith.constant 0 : index
    %c0_31 = arith.constant 0 : index
    %c0_32 = arith.constant 0 : index
    %52 = vector.load %arg2[%c0_30, %c0_31, %c0_32] : memref<1x32x256xf32, #tpu.memory_space<vmem>>, vector<1x32x256xf32>
    %53 = vector.shape_cast %52 : vector<1x32x256xf32> to vector<32x256xf32>
    %54 = arith.addf %51, %53 : vector<32x256xf32>
    %cst_33 = arith.constant 0.000000e+00 : f32
    %55 = vector.broadcast %cst_33 : f32 to vector<32x256xf32>
    %56 = arith.maximumf %54, %55 : vector<32x256xf32>
    %c0_34 = arith.constant 0 : index
    %c0_35 = arith.constant 0 : index
    %c0_36 = arith.constant 0 : index
    %57 = vector.load %arg10[%c0_34, %c0_35, %c0_36] : memref<1x32x256xf32, #tpu.memory_space<vmem>>, vector<1x32x256xf32>
    %58 = vector.shape_cast %57 : vector<1x32x256xf32> to vector<32x256xf32>
    %59 = vector.shape_cast %56 : vector<32x256xf32> to vector<1x32x256xf32>
    tpu.vector_store %arg10[%c0_34, %c0_35, %c0_36], %59 {strides = array<i32>} : memref<1x32x256xf32, #tpu.memory_space<vmem>>, vector<1x32x256xf32>,
    return
  }
  func.func @transform_0(%arg0: i32, %arg1: i32) -> (i32, i32, i32) {
    %c0_i32 = arith.constant 0 : i32
    %c0_i32_0 = arith.constant 0 : i32
    return %arg0, %c0_i32, %arg1 : i32, i32, i32
  }
  func.func @transform_1(%arg0: i32, %arg1: i32) -> (i32, i32, i32, i32) {
    %c0_i32 = arith.constant 0 : i32
    %c0_i32_0 = arith.constant 0 : i32
    %c0_i32_1 = arith.constant 0 : i32
    return %arg0, %arg1, %c0_i32, %c0_i32_0 : i32, i32, i32, i32
  }
  func.func @transform_2(%arg0: i32, %arg1: i32) -> (i32, i32) {
    %c0_i32 = arith.constant 0 : i32
    %c0_i32_0 = arith.constant 0 : i32
    %c0_i32_1 = arith.constant 0 : i32
    return %c0_i32, %c0_i32_0 : i32, i32
  }
  func.func @transform_3(%arg0: i32, %arg1: i32) -> (i32, i32, i32) {
    %c0_i32 = arith.constant 0 : i32
    %c0_i32_0 = arith.constant 0 : i32
    %c0_i32_1 = arith.constant 0 : i32
    %c0_i32_2 = arith.constant 0 : i32
    return %c0_i32, %c0_i32_0, %c0_i32_1 : i32, i32, i32
  }
  func.func @transform_4(%arg0: i32, %arg1: i32) -> (i32, i32) {
    %c0_i32 = arith.constant 0 : i32
    %c0_i32_0 = arith.constant 0 : i32
    %c0_i32_1 = arith.constant 0 : i32
    return %c0_i32, %c0_i32_0 : i32, i32
  }
  func.func @transform_5(%arg0: i32, %arg1: i32) -> (i32, i32) {
    %c0_i32 = arith.constant 0 : i32
    %c0_i32_0 = arith.constant 0 : i32
    %c0_i32_1 = arith.constant 0 : i32
    return %c0_i32, %c0_i32_0 : i32, i32
  }
  func.func @transform_6(%arg0: i32, %arg1: i32) -> (i32, i32) {
    %c0_i32 = arith.constant 0 : i32
    %c0_i32_0 = arith.constant 0 : i32
    %c0_i32_1 = arith.constant 0 : i32
    return %c0_i32, %c0_i32_0 : i32, i32
  }
  func.func @transform_7(%arg0: i32, %arg1: i32) -> (i32, i32) {
    %c0_i32 = arith.constant 0 : i32
    %c0_i32_0 = arith.constant 0 : i32
    %c0_i32_1 = arith.constant 0 : i32
    return %c0_i32, %c0_i32_0 : i32, i32
  }
  func.func @transform_8(%arg0: i32, %arg1: i32) -> (i32, i32, i32) {
    %c0_i32 = arith.constant 0 : i32
    %c0_i32_0 = arith.constant 0 : i32
    return %arg0, %c0_i32, %arg1 : i32, i32, i32
  }
}

</mosaic_0001>

<bundles_post_ra>
// kernel: tpu_custom_call.1
= control target key start
LH: loop header
LB: loop body
LE: loop exit
PB: predicated region body
PF: predicated region fallthrough
CT: control target
= control target key end

     0   :  { %13 = vsyncpa [#allocation3], 0  ;;  %s1433_s0 = inlined_call_operand.hbm [shape: f32[2,32,256], index: 0, kind: input, shape index: {}]   ;;  %s1434_s1 = inlined_call_operand.vmem [shape: f32[2,1,8,2], index: 1, kind: input, shape index: {}]   ;;  %s1435_s2 = inlined_call_operand.vmem [shape: bf16[8,32], index: 2, kind: input, shape index: {}]   ;;  %s1436_s3 = inlined_call_operand.vmem [shape: bf16[3,8,8], index: 3, kind: input, shape index: {}]   ;;  %s1437_s4 = inlined_call_operand.vmem [shape: bf16[32,8], index: 4, kind: input, shape index: {}]   ;;  %s1438_s5 = inlined_call_operand.vmem [shape: f32[8,1], index: 5, kind: input, shape index: {}]   ;;  %s1439_s6 = inlined_call_operand.vmem [shape: f32[8,1], index: 6, kind: input, shape index: {}]   ;;  %s1440_s7 = inlined_call_operand.vmem [shape: f32[32,1], index: 7, kind: input, shape index: {}]   ;;  %s1441_s8 = inlined_call_operand.hbm [shape: f32[2,32,256], index: 8, kind: output, shape index: {}]  }
   0x1   :  { %15 = vsyncpa [#allocation3 + $0x1], 0 }
   0x2   :  { %16 = vsyncpa [#allocation4], 0 }
   0x3   :  { %18 = vsyncpa [#allocation4 + $0x1], 0  ;;  %s1178_s27 = smov 0   ;;  %s1180_s28 = smov 0  }
   0x4   :  { %s1182_s29 = smov 0   ;;  %s1184_s30 = smov 0  }
   0x5   :  { %s1186_s9 = smov 0   ;;  %s1188_s10 = smov 0  }
   0x6 LB: > { %1444 = sst [smem:[#allocation8_spill]] %s1117_s9  ;;  %s896_s11 = sadd.s32 4294967295, %s1121_s10   ;;  %s1121_s10 = sphi %s1188_s10, %s24_s10   ;;  %s1117_s9 = sphi %s1186_s9, %s1453_s9   ;;  %s1113_s30 = sphi %s1184_s30, %s1452_s30   ;;  %s1109_s29 = sphi %s1182_s29, %s1456_s29   ;;  %s1105_s28 = sphi %s1180_s28, %s1455_s28   ;;  %s1101_s27 = sphi %s1178_s27, %s1454_s27  }
   0x7   : > { %s897_s12 = sadd.s32 4294967294, %s1121_s10   ;;  %s36_s13 = sadd.s32 1, %s1117_s9 }
   0x8   : > { %s45_s14 = sadd.s32 1, %s1109_s29  ;;  %p38_p0 = scmp.ge.s32.totalorder %s36_s13, 2 }
   0x9   : > { %p52_p1 = scmp.ne.s32.totalorder %s1109_s29, %s1105_s28  ;;  %p53_p2 = scmp.eq.s32.totalorder %s1121_s10, 0 }
   0xa   : > { %p58_p3 = scmp.ne.s32.totalorder %s1105_s28, %s1101_s27  ;;  %s1458_s13 = smov (%p38_p0, %s36_s13), 0 }
   0xb   : > { %1445 = sst [smem:[#allocation9_spill]] %s1458_s13  ;;  %p1219_p4 = por %p53_p2, %p52_p1 }
   0xc   : > { %p59_p5 = scmp.eq.s32.totalorder %s896_s11, 0  ;;  %s40_s16 = ssub.s32 %s1117_s9, %s1458_s13 }
   0xd   : > { %p238_p6 = scmp.eq.s32.totalorder %s896_s11, 1  ;;  %p43_p7 = scmp.eq.s32.totalorder %s40_s16, 0 }
   0xe   : > { %p1225_p8 = por %p59_p5, %p58_p3  ;;  %p244_p10 = scmp.eq.s32.totalorder %s897_s12, 1 }
   0xf   : > { %p1229_p9 = por %p238_p6, %p52_p1  ;;  %p940_p13 = scmp.lt.s32.totalorder %s1121_s10, 2 }
  0x10   : > { %s1234_s19 = scalar_select %p43_p7, %s1109_s29, %s45_s14  }
  0x11   : > { %p1236_p11 = por %p244_p10, %p58_p3  ;;  %s282_s21 = sand.u32 1, %s1109_s29  }
  0x12   : > { %s900_s22 = sshll.u32 %s282_s21, 6  ;;  %s926_s23 = sshll.u32 %s1117_s9, 10 }
  0x13   : > { %s294_s26 = scalar_lea.hbm %s1433_s0, %s926_s23  ;;  %s286_s11 = scalar_lea.vmem [#allocation2], %s900_s22 }
  0x14   : > { %s295_s16 = sshll.u32 %s286_s11, 4  ;;  %p1249_p0 = pnand %p940_p13, %p1219_p4  ;;  %s296_s16 = int_to_ptr.vmem [resolvable:$true] %s295_s16 }
  0x15   : > { %p903_p1 = scmp.ge.s32.totalorder %s1121_s10, 1  ;;  %s283_s14 = scalar_lea.sflag [#allocation3], %s282_s21 }
  0x16   : > { %p1015_p2 = pneg %p1249_p0  ;;  %s1026_s13 = scalar_lea.vmem %s296_s16, 1024 }
  0x17   : > { %p1027_p3 = scmp.ne.s32.totalorder %s296_s16, %s1026_s13  ;;  %s1123_s9 = smov [#allocation2]  }
  0x18   : > { %s1031_s24 = sshll.u32 %s1123_s9, 4  ;;  %s1032_s24 = int_to_ptr.vmem [resolvable:$false] %s1031_s24 }
  0x19   : > { %p1029_p5 = pnand %p1027_p3, %p1015_p2  ;;  %s1033_s22 = scalar_lea.vmem %s1032_s24, 2048 }
  0x1a   : > { %p1034_p7 = scmp.lt.s32.totalorder %s296_s16, %s1032_s24  ;;  %p1035_p10 = scmp.lt.s32.totalorder %s1033_s22, %s1026_s13 }
  0x1b   : > { %p1030_p6 = pneg %p1029_p5 }
  0x1c   : > { %p1036_p12 = por %p1035_p10, %p1034_p7 }
  0x1e   : > { %p1037_p4 = pnand %p1036_p12, %p1030_p6 }
  0x20   : > { %1040 = shalt.err (!%p1037_p4)
}
  0x21   : > { %s1124_s15 = smov 256   ;;  %s1125_s21 = smov 16  }
  0x22   : > { %935 = dma.hbm_to_vmem [thread:$0]  (!%p1249_p0), %s294_s26, 1024, %s296_s16, %s283_s14, %s1124_s15, %s1124_s15, %s1125_s21  }
  0x23   : > { %p313_p13 = scmp.lt.s32.totalorder %s1121_s10, 3 }
  0x25   : > { %p314_p2 = pnand %p903_p1, %p313_p13 }
  0x26   : > { %s1262_s9 = sand.u32 (!%p314_p2), 1, %s1105_s28  }
  0x27   : > { %317 = sbr.rel (%p314_p2) target bundleno = 819 (0x333), region = 52  ;;  %s904_s13 = sshll.u32 (!%p314_p2), %s1262_s9, 6 }
  0x28   : > { %s320_s23 = scalar_lea.sflag (!%p314_p2), [#allocation3], %s1262_s9  ;;  %s323_s25 = scalar_lea.vmem (!%p314_p2), [#allocation2], %s904_s13 }
  0x2c   : > { %1092 = dma.done.wait (%p1225_p8), %s320_s23, 1024  }
  0x2d   : > { %1094 = vsyncadd (%p1225_p8), %s320_s23, 4294966272  ;;  %p364_p12 = scmp.lt.s32.totalorder %s1113_s30, 1  ;;  %v1126_v0 = vmov 0   ;;  %v1127_v1 = vmov 1   ;;  %v1277_v2 = vld [vmem:[%s323_s25 + $0x28] sm:$0xff]  ;;  %v1279_v3 = vld [vmem:[%s323_s25 + $0x38] sm:$0xff]  ;;  %v440_v36 = vlaneseq }
  0x2e   : > { %428 = vmatprep.mubr.bf16.mxu0 %v1126_v0  ;;  %998 = vset.pattern.permute.xlu0 %v1126_v0  ;;  %v1281_v4 = vld [vmem:[%s323_s25 + $0x20] sm:$0xff]  ;;  %v384_v5 = vpack.c.bf16 %v1279_v3, %v1277_v2  ;;  %v1288_v6 = vld [vmem:[%s323_s25 + $0x30] sm:$0xff]  ;;  %v1290_v7 = vld [vmem:[%s323_s25 + $0x8] sm:$0xff]  ;;  %vm392_vm0 = vcmask 261120   ;;  %vm487_vm1 = vcmask 1043456   ;;  %s1128_s21 = smov 127  }
  0x2f   : > { %s365_s26 = scalar_select %p364_p12, %s1113_s30, 1  ;;  %999 = vset.pattern.permute.xlu1 %v1127_v1  ;;  %576 = vmatprep.mubr.bf16.mxu1 %v1126_v0  ;;  %v1292_v8 = vld [vmem:[%s323_s25 + $0x18] sm:$0xff]  ;;  %v383_v9 = vpack.c.bf16 %v1288_v6, %v1281_v4  ;;  %v1298_v11 = vld [vmem:[%s323_s25] sm:$0xff]  ;;  %v1300_v12 = vld [vmem:[%s323_s25 + $0x10] sm:$0xff]  ;;  %vm483_vm2 = vcmask 64512   ;;  %v441_v37 = vand.u32 127, %v440_v36 }
  0x30   : > { %v382_v10 = vpack.c.bf16 %v1292_v8, %v1290_v7  ;;  %408 = vmatprep.subr.bf16.mxu0 %v384_v5  ;;  %v386_v13 = vld [vmem:[%s1438_s5] sm:$0xff]  ;;  %v381_v15 = vpack.c.bf16 %v1300_v12, %v1298_v11  ;;  %s1129_s23 = smov 1   ;;  %v657_v33 = vld [vmem:[%s1440_s7 + $0x10] sm:$0xff]  ;;  %v656_v34 = vld [vmem:[%s1440_s7 + $0x8] sm:$0xff]  ;;  %s1362_s22 = scalar_lea.vmem [#allocation5], %s904_s13 }
  0x31   : > { %s906_s11 = sshll.u32 %s365_s26, 3  ;;  %409 = vmatpush1.bf16.msra.mxu0 %v383_v9  ;;  %389 = vperm.xlu0 %998, %v386_v13   ;;  %v385_v16 = vld [vmem:[%s1435_s2] sm:$0xf]  ;;  %v908_v31 = vld [vmem:[%s1436_s3 + $0x4] sm:$0xf]  ;;  %v658_v35 = vld [vmem:[%s1440_s7 + $0x18] sm:$0xff] }
  0x32   : > { %s370_s12 = scalar_lea.vmem %s1434_s1, %s906_s11  ;;  %410 = vmatprep.subr.bf16.mxu0 %v382_v10  ;;  %v655_v30 = vld [vmem:[%s1440_s7] sm:$0xff]  ;;  %v442_v40 = vadd.s32 128, %v441_v37  ;;  %vm454_vm3 = vcmp.lt.s32.totalorder %v441_v37, 127  ;;  %vm447_vm4 = vcmp.lt.s32.totalorder %v441_v37, 1  ;;  %vm457_vm6 = vcmp.eq.s32.totalorder %v441_v37, 0  ;;  %s794_s13 = sshll.u32 %s1362_s22, 4  ;;  %s1376_s13 = int_to_ptr.vmem [resolvable:$true] %s794_s13 }
  0x33   : > { %v439_v14 = vld [vmem:[%s370_s12] sm:$0xff]  ;;  %v913_v59 = vld [vmem:[%s1436_s3 + $0x8] sm:$0xf]  ;;  %s927_s15 = sshll.u32 %s1113_s30, 10  ;;  %s779_s26 = scalar_lea.sflag [#allocation4], %s1262_s9 }
  0x34   : > { %471 = vperm.xlu1 %999, %v439_v14   ;;  %v639_v32 = vld [vmem:[%s1439_s6] sm:$0xff]  ;;  %vm469_vm5 = vcmp.eq.s32.totalorder %v442_v40, 255  ;;  %s1383_s25 = scalar_lea.hbm %s1441_s8, %s927_s15  ;;  %s1041_s11 = scalar_lea.vmem %s1376_s13, 1024 }
  0x35   : > { %411 = vmatpush1.bf16.msra.mxu0 %v381_v15  ;;  %461 = vperm.xlu0 %998, %v439_v14   ;;  %v480_v60 = vld [vmem:[%s1436_s3] sm:$0xf]  ;;  %p1042_p8 = scmp.ne.s32.totalorder %s1376_s13, %s1041_s11  ;;  %s1130_s30 = smov [#allocation5]  }
  0x36   : > { %s1045_s17 = sshll.u32 %s1130_s30, 4  ;;  %s1046_s17 = int_to_ptr.vmem [resolvable:$false] %s1045_s17 }
  0x37   : > { %p1043_p0 = pnand %p1042_p8, %p1229_p9  ;;  %s1047_s16 = scalar_lea.vmem %s1046_s17, 2048 }
  0x38   : > { %1010 = vset.pattern.permute.xlu1 %v1126_v0  ;;  %907 = vmatmul.mubr.msk.bf16.vlgmr.msra.gmra.mxu0 %vm392_vm0, %v385_v16  ;;  %p1048_p3 = scmp.lt.s32.totalorder %s1376_s13, %s1046_s17  ;;  %p1049_p5 = scmp.lt.s32.totalorder %s1047_s16, %s1041_s11 }
  0x39   : > { %526 = vmatprep.mubr.bf16.mxu0 %v1126_v0  ;;  %p1044_p1 = pneg %p1043_p0 }
  0x3a   : > { %p1050_p6 = por %p1049_p5, %p1048_p3 }
  0x3c   : > { %p1051_p7 = pnand %p1050_p6, %p1044_p1 }
  0xac   : > { %v390_v17 = vpop.permute.xlu0 %389 }
  0xaf   : > { %v472_v38 = vpop.permute.xlu1 %471 }
  0xb0   : > { %v462_v39 = vpop.permute.xlu0 %461 }
  0xf8   : > { %v430_v18 = vpop.f32.mrf.mxu0 }
  0xf9   : > { %v431_v19 = vadd.f32 %v430_v18, %v390_v17 }
  0xfa   : > { %v432_v20 = vpop.f32.mrf.mxu0 }
  0xfb   : > { %v437_v21 = vmax.f32 %v431_v19, 0.0  ;;  %v433_v22 = vadd.f32 %v432_v20, %v390_v17 }
  0xfc   : > { %v434_v23 = vpop.f32.mrf.mxu0 }
  0xfd   : > { %v438_v24 = vmax.f32 %v433_v22, 0.0  ;;  %v478_v25 = vpack.c.bf16 %v437_v21, %v437_v21 }
  0xfe   : > { %v435_v26 = vpop.f32.mrf.mxu0 }
  0xff   : > { %v479_v27 = vpack.c.bf16 %v438_v24, %v438_v24  ;;  %v1005_v28 = vpack.i.bf16 %v438_v24, %v437_v21  ;;  %v489_v29 = vsel %vm487_vm1, %v478_v25, 0 }
 0x101   : > { %909 = vmatprep.subr.msk.bf16.mxu0 %vm487_vm1, %v479_v27  ;;  %1006 = vrot.lane.b32.xlu0 %v1005_v28, %s1128_s21 }
 0x102   : > { %1001 = vrot.lane.b32.xlu1 %v1005_v28, %s1129_s23  ;;  %509 = vmatpush1.bf16.msra.mxu0 %v489_v29 }
 0x105   : > { %661 = vperm.xlu0 %998, %v655_v30   ;;  %910 = vmatmul.mubr.msk.bf16.vlgmr.msra.gmra.mxu0 %vm483_vm2, %v908_v31  ;;  %v1011_v30 = vld [vmem:[%s1437_s4] sm:$0xff]   ;;  %v1012_v31 = vld [vmem:[%s1437_s4 + $0x8] sm:$0xff]  }
 0x106   : > { %628 = vmatprep.mubr.bf16.mxu0 %v1126_v0  ;;  %642 = vperm.xlu1 %1010, %v639_v32  }
 0x109   : > { %671 = vperm.xlu0 %998, %v657_v33  }
 0x10a   : > { %666 = vperm.xlu1 %1010, %v656_v34  }
 0x10e   : > { %676 = vperm.xlu1 %1010, %v658_v35  }
 0x173   : > { %v1007_v41 = vpop.permute.xlu0 %1006 }
 0x174   : > { %v1009_v42 = vunpack.i.h.bf16 %v1007_v41  ;;  %v1008_v43 = vunpack.i.l.bf16 %v1007_v41  ;;  %v1002_v44 = vpop.permute.xlu1 %1001 }
 0x175   : > { %v1004_v45 = vunpack.i.h.bf16 %v1002_v44  ;;  %v1003_v46 = vunpack.i.l.bf16 %v1002_v44 }
 0x176   : > { %v456_v47 = vsel %vm454_vm3, %v1009_v42, %v1008_v43  ;;  %v455_v48 = vsel %vm454_vm3, %v1008_v43, %v1009_v42 }
 0x177   : > { %v448_v49 = vsel %vm447_vm4, %v1003_v46, %v1004_v45  ;;  %v475_v50 = vsel %vm469_vm5, %v472_v38, %v456_v47  ;;  %v449_v51 = vsel %vm447_vm4, %v1004_v45, %v1003_v46  ;;  %v476_v52 = vpack.c.bf16 %v455_v48, %v455_v48 }
 0x178   : > { %v467_v53 = vpack.c.bf16 %v448_v49, %v448_v49  ;;  %v477_v54 = vpack.c.bf16 %v475_v50, %v475_v50  ;;  %v464_v55 = vsel %vm457_vm6, %v462_v39, %v449_v51 }
 0x179   : > { %v466_v56 = vpack.c.bf16 %v464_v55, %v464_v55  ;;  %v591_v57 = vsel %vm487_vm1, %v476_v52, 0 }
 0x17a   : > { %911 = vmatprep.subr.msk.bf16.mxu1 %vm487_vm1, %v467_v53  ;;  %914 = vmatprep.subr.msk.bf16.mxu0 %vm487_vm1, %v477_v54 }
 0x17b   : > { %v539_v58 = vsel %vm487_vm1, %v466_v56, 0  ;;  %611 = vmatpush1.bf16.msra.mxu0 %v591_v57 }
 0x17c   : > { %559 = vmatpush1.bf16.msra.mxu1 %v539_v58 }
 0x17e   : > { %915 = vmatmul.mubr.msk.bf16.vlgmr.msra.gmra.mxu0 %vm483_vm2, %v913_v59 }
 0x17f   : > { %912 = vmatmul.mubr.msk.bf16.vlgmr.msra.gmra.mxu1 %vm483_vm2, %v480_v60 }
 0x180   : > { %733 = vmatprep.mubr.bf16.mxu1 %v1126_v0  ;;  %v662_v32 = vpop.permute.xlu0 %661 }
 0x181   : > { %v643_v18 = vpop.permute.xlu1 %642 }
 0x184   : > { %v672_v45 = vpop.permute.xlu0 %671 }
 0x185   : > { %v667_v38 = vpop.permute.xlu1 %666 }
 0x189   : > { %v677_v53 = vpop.permute.xlu1 %676 }
 0x1c5   : > { %v528_v61 = vpop.f32.mrf.mxu0 }
 0x1c7   : > { %v530_v62 = vpop.f32.mrf.mxu0 }
 0x1c9   : > { %v532_v63 = vpop.f32.mrf.mxu0 }
 0x1cb   : > { %v533_v1 = vpop.f32.mrf.mxu0 }
 0x23e   : > { %v630_v5 = vpop.f32.mrf.mxu0 }
 0x23f   : > { %v578_v9 = vpop.f32.mrf.mxu1 }
 0x240   : > { %v579_v10 = vadd.f32 %v578_v9, %v528_v61  ;;  %v632_v13 = vpop.f32.mrf.mxu0 }
 0x241   : > { %v580_v14 = vpop.f32.mrf.mxu1 }
 0x242   : > { %v637_v15 = vadd.f32 %v630_v5, %v579_v10  ;;  %v581_v16 = vadd.f32 %v580_v14, %v530_v62  ;;  %v634_v17 = vpop.f32.mrf.mxu0 }
 0x243   : > { %v582_v19 = vpop.f32.mrf.mxu1 }
 0x244   : > { %v645_v20 = vadd.f32 %v643_v18, %v637_v15  ;;  %v638_v21 = vadd.f32 %v632_v13, %v581_v16  ;;  %v635_v22 = vpop.f32.mrf.mxu0 }
 0x245   : > { %v583_v23 = vpop.f32.mrf.mxu1 }
 0x246   : > { %v647_v24 = vmax.f32 %v645_v20, 0.0  ;;  %v646_v25 = vadd.f32 %v643_v18, %v638_v21 }
 0x248   : > { %v653_v26 = vpack.c.bf16 %v647_v24, %v647_v24  ;;  %v648_v27 = vmax.f32 %v646_v25, 0.0 }
 0x24a   : > { %v654_v28 = vpack.c.bf16 %v648_v27, %v648_v27  ;;  %v696_v29 = vsel %vm487_vm1, %v653_v26, 0 }
 0x24c   : > { %918 = vmatprep.subr.msk.bf16.mxu1 %vm487_vm1, %v654_v28 }
 0x24d   : > { %716 = vmatpush1.bf16.msra.mxu1 %v696_v29 }
 0x250   : > { %919 = vmatmul.mubr.msk.bf16.vlgmr.msra.gmra.mxu1 %vm483_vm2, %v1011_v30 }
 0x251   : > { %743 = vmatprep.mubr.bf16.mxu1 %v1126_v0 }
 0x258   : > { %920 = vmatmul.mubr.msk.bf16.gmra.mxu1 %vm483_vm2, %v1012_v31 }
 0x310   : > { %v735_v33 = vpop.f32.mrf.mxu1 }
 0x311   : > { %v736_v34 = vadd.f32 %v735_v33, %v662_v32 }
 0x312   : > { %v737_v35 = vpop.f32.mrf.mxu1 }
 0x313   : > { %v754_v36 = vadd.f32 %v736_v34, %v1298_v11  ;;  %v738_v37 = vadd.f32 %v737_v35, %v662_v32 }
 0x314   : > { %v739_v39 = vpop.f32.mrf.mxu1 }
 0x315   : > { %v762_v40 = vmax.f32 %v754_v36, 0.0  ;;  %v755_v41 = vadd.f32 %v738_v37, %v1290_v7  ;;  %v740_v42 = vadd.f32 %v739_v39, %v667_v38 }
 0x316   : > { %v741_v0 = vpop.f32.mrf.mxu1 }
 0x317   : > { %770 = vst [vmem:[%s1362_s22] sm:$0xff] %v762_v40  ;;  %v763_v43 = vmax.f32 %v755_v41, 0.0  ;;  %v756_v44 = vadd.f32 %v740_v42, %v1300_v12  ;;  %v742_v11 = vadd.f32 %v741_v0, %v667_v38 }
 0x318   : > { %v745_v46 = vpop.f32.mrf.mxu1 }
 0x319   : > { %771 = vst [vmem:[%s1362_s22 + $0x8] sm:$0xff] %v763_v43  ;;  %v764_v47 = vmax.f32 %v756_v44, 0.0  ;;  %v757_v7 = vadd.f32 %v742_v11, %v1292_v8  ;;  %v746_v48 = vadd.f32 %v745_v46, %v672_v45 }
 0x31a   : > { %v747_v49 = vpop.f32.mrf.mxu1 }
 0x31b   : > { %772 = vst [vmem:[%s1362_s22 + $0x10] sm:$0xff] %v764_v47  ;;  %v765_v50 = vmax.f32 %v757_v7, 0.0  ;;  %v758_v51 = vadd.f32 %v746_v48, %v1281_v4  ;;  %v748_v52 = vadd.f32 %v747_v49, %v672_v45 }
 0x31c   : > { %v749_v12 = vpop.f32.mrf.mxu1 }
 0x31d   : > { %773 = vst [vmem:[%s1362_s22 + $0x18] sm:$0xff] %v765_v50  ;;  %v766_v54 = vmax.f32 %v758_v51, 0.0  ;;  %v759_v55 = vadd.f32 %v748_v52, %v1277_v2  ;;  %v750_v56 = vadd.f32 %v749_v12, %v677_v53 }
 0x31e   : > { %v751_v8 = vpop.f32.mrf.mxu1 }
 0x31f   : > { %774 = vst [vmem:[%s1362_s22 + $0x20] sm:$0xff] %v766_v54  ;;  %v767_v57 = vmax.f32 %v759_v55, 0.0  ;;  %v760_v58 = vadd.f32 %v750_v56, %v1288_v6  ;;  %v752_v4 = vadd.f32 %v751_v8, %v677_v53 }
 0x321   : > { %775 = vst [vmem:[%s1362_s22 + $0x28] sm:$0xff] %v767_v57  ;;  %v768_v59 = vmax.f32 %v760_v58, 0.0  ;;  %v761_v2 = vadd.f32 %v752_v4, %v1279_v3 }
 0x323   : > { %776 = vst [vmem:[%s1362_s22 + $0x30] sm:$0xff] %v768_v59  ;;  %v769_v60 = vmax.f32 %v761_v2, 0.0 }
 0x325   : > { %777 = vst [vmem:[%s1362_s22 + $0x38] sm:$0xff] %v769_v60 }
 0x326   : > { %1054 = shalt.err (!%p1051_p7)
}
 0x327   : > { %s1055_s12 = scalar_lea.hbm %s1383_s25, 1024  ;;  %s1059_s22 = scalar_lea.hbm %s1441_s8, 2048 }
 0x328   : > { %p1056_p10 = scmp.ne.s32.totalorder %s1383_s25, %s1055_s12  ;;  %p1060_p2 = scmp.lt.s32.totalorder %s1383_s25, %s1441_s8 }
 0x329   : > { %p1061_p12 = scmp.lt.s32.totalorder %s1059_s22, %s1055_s12 }
 0x32a   : > { %p1057_p4 = pnand %p1056_p10, %p1229_p9 }
 0x32b   : > { %p1062_p8 = por %p1061_p12, %p1060_p2 }
 0x32c   : > { %p1058_p13 = pneg %p1057_p4 }
 0x32e   : > { %p1063_p0 = pnand %p1062_p8, %p1058_p13 }
 0x330   : > { %1066 = shalt.err (!%p1063_p0)
}
 0x331   : > { %s1131_s23 = smov 256   ;;  %s1132_s11 = smov 16  }
 0x332   : > { %930 = dma.vmem_to_hbm [thread:$0]  (%p1229_p9), %s1376_s13, 1024, %s1383_s25, %s779_s26, %s1131_s23, %s1131_s23, %s1132_s11  }
 0x333 PF: > { %s809_s30 = sand.u32 1, %s1101_s27   ;;  %p1451_p1 = scmp.ge.s32.totalorder %s1121_s10, 2 }
 0x334   : > { %s810_s17 = scalar_lea.sflag [#allocation4], %s809_s30 }
 0x335   : > { %p937_p3 = pnand %p1451_p1, %p1236_p11 }
 0x337   : > { %p938_p5 = pneg %p937_p3 }
 0x339   : > { %1096 = dma.done.wait (%p938_p5), %s810_s17, 1024  }
 0x33a   : > { %1098 = vsyncadd (%p938_p5), %s810_s17, 4294966272  ;;  %s24_s10 = sadd.s32 1, %s1121_s10   ;;  %s1452_s30 = sld [smem:[#allocation8_spill]] }
 0x33b   : > { %p21_p6 = scmp.ge.s32.totalorder %s24_s10, 4   ;;  %s1453_s9 = sld [smem:[#allocation9_spill]] }
 0x33c   : > { %s1454_s27 = smov %s1105_s28  ;;  %s1455_s28 = smov %s1109_s29 }
 0x33d   : > { %s1456_s29 = smov %s1234_s19  ;;  %23 = sbr.rel (!%p21_p6) target bundleno = 6 (0x6), region = 102 }
 0x342   :  { %815 = vsyncpa [#allocation3], 1 }
 0x343   :  { %817 = vsyncpa [#allocation3 + $0x1], 1 }
 0x344   :  { %818 = vsyncpa [#allocation4], 1 }
 0x345   :  { %820 = vsyncpa [#allocation4 + $0x1], 1 }

</bundles_post_ra>
